<compile_context>
chip_gen: v5e
topology: v5e:2x2
jax: 0.10.0
libtpu: 0.0.40
codegen_flags: <defaults>
</compile_context>

<pallas_src>
import functools

import jax
import jax.numpy as jnp
from jax import lax
from jax.experimental import pallas as pl
from jax.experimental.pallas import tpu as pltpu


def _mha_kernel(qin_ref, kproj_ref, vproj_ref, wqt_ref, wfct_ref,
                g_ref, b_ref, o_ref, *, n_head, d_k, d_v, compute_dtype):
    cd = compute_dtype

    xq = qin_ref[0]                      # (TM, D)  query tile (also residual)

    # --- Q projection for this tile (1/sqrt(d_k) already folded into Wq^T) ---
    Q = jnp.dot(xq.astype(cd), wqt_ref[...],
                preferred_element_type=jnp.float32)            # (TM, HK) f32
    Qc = Q.astype(cd)                                          # cast once

    K = kproj_ref[0]                     # (Nkv, HK) already compute_dtype
    V = vproj_ref[0]                     # (Nkv, HV) already compute_dtype

    # --- per-head attention ---
    # TODO(synk): for H >= 8 / long Nkv, switch this static unroll to a
    #             lax.fori_loop carrying the ctx accumulator (bounds vreg
    #             live ranges); fine for small H.
    ctx_heads = []
    for h in range(n_head):
        q_h = Qc[:, h * d_k:(h + 1) * d_k]                     # (TM, dk)
        k_h = K[:, h * d_k:(h + 1) * d_k]                      # (Nkv, dk)
        v_h = V[:, h * d_v:(h + 1) * d_v]                      # (Nkv, dv)

        # scores: contract d_k without an explicit transpose
        s = lax.dot_general(q_h, k_h, (((1,), (1,)), ((), ())),
                            preferred_element_type=jnp.float32)  # (TM, Nkv) f32

        # softmax kept in f32 (v5e VPU/EUP have no bf16); normalization is
        # folded into ctx below instead of dividing the (TM, Nkv) tile.
        m = jnp.max(s, axis=-1, keepdims=True)
        p = jnp.exp(s - m)
        l = jnp.sum(p, axis=-1, keepdims=True)

        ctx = jnp.dot(p.astype(cd), v_h,
                      preferred_element_type=jnp.float32)        # (TM, dv)
        ctx_heads.append(ctx * pl.reciprocal(l, approx=True))

    # --- single full-depth output projection: (TM, HV) @ (HV, D) ---
    ctx_all = jnp.concatenate(ctx_heads, axis=-1).astype(cd)     # (TM, HV)
    proj = jnp.dot(ctx_all, wfct_ref[...],
                   preferred_element_type=jnp.float32)           # (TM, D) f32

    # --- relu (+ dropout identity) + residual ---
    y = jnp.maximum(proj, 0.0) + xq

    # --- LayerNorm over d_model, centered two-pass (cancellation-safe) ---
    mu = jnp.mean(y, axis=-1, keepdims=True)
    yc = y - mu
    var = jnp.mean(yc * yc, axis=-1, keepdims=True)
    yn = yc * lax.rsqrt(var + 1e-6)
    o_ref[0] = (yn * g_ref[...] + b_ref[...]).astype(o_ref.dtype)


def _vmem_budget_bytes():
    """Per-TC VMEM budget, derived from the actual chip with headroom."""
    try:
        cap = int(pltpu.get_tpu_info().vmem_capacity_bytes)
    except Exception:
        cap = 64 * 1024 * 1024            # conservative fallback (v7x per-TC)
    return max(int(cap * 0.75), 16 * 1024 * 1024)


def _pick_token_tile(nq, nkv, d_model, hk, hv, cd_bytes, vmem_budget):
    """Largest legal token tile whose estimated VMEM footprint fits budget."""
    cands = [t for t in (1024, 512, 256, 128, 64, 32, 16, 8) if nq % t == 0]
    if not cands:
        return nq                          # full-extent block (always legal)
    fixed = (2 * nkv * (hk + hv) * cd_bytes            # dbl-buffered K/V proj
             + (d_model * hk + hv * d_model) * cd_bytes  # resident weights
             + 2 * 2 * d_model * 4)                     # LN params
    for tm in cands:
        per_tile = (2 * 2 * tm * d_model * 4            # dbl-buffered q in + out
                    + 3 * tm * nkv * 4                  # live f32 score tiles
                    + tm * (hk + hv + d_model) * 4)     # Q / ctx / proj live
        if fixed + per_tile <= 0.8 * vmem_budget:
            return tm
    return cands[-1]                       # TODO(synk): flash kv-tiling instead


def multi_head_attention(q, k, v, params, *, n_head, d_k, d_v,
                         compute_dtype=jnp.float32, out_dtype=None):
    """q, k, v: (B, N, d_model). Returns (B, Nq, d_model)."""
    B, Nq, D = q.shape
    _, Nkv, _ = k.shape
    assert k.shape == (B, Nkv, D) and v.shape == (B, Nkv, D)
    HK = n_head * d_k
    HV = n_head * d_v
    out_dtype = q.dtype if out_dtype is None else out_dtype
    cd_bytes = jnp.dtype(compute_dtype).itemsize

    # nn.Linear weight is (out, in); kernel uses x @ W^T layouts.
    # Fold the 1/sqrt(d_k) softmax scale into Wq^T; cast weights once.
    scale = 1.0 / (float(d_k) ** 0.5)
    wq_t = (params["w_qs"].T * scale).astype(compute_dtype)     # (D, HK)
    wfc_t = params["fc"].T.astype(compute_dtype)                # (HV, D)
    gamma = params["ln_gamma"].reshape(1, D).astype(jnp.float32)
    beta = params["ln_beta"].reshape(1, D).astype(jnp.float32)

    # K/V projections are independent of the q-token tile: compute them ONCE
    # as plain XLA GEMMs (not NT times inside the grid) and pass them in,
    # already cast to compute_dtype.
    k_proj = jnp.matmul(k, params["w_ks"].T,
                        preferred_element_type=jnp.float32).astype(compute_dtype)
    v_proj = jnp.matmul(v, params["w_vs"].T,
                        preferred_element_type=jnp.float32).astype(compute_dtype)

    vmem_budget = _vmem_budget_bytes()
    TM = _pick_token_tile(Nq, Nkv, D, HK, HV, cd_bytes, vmem_budget)
    NT = Nq // TM

    kernel = functools.partial(_mha_kernel, n_head=n_head, d_k=d_k, d_v=d_v,
                               compute_dtype=compute_dtype)

    # CostEstimate for what the kernel actually executes (K/V proj hoisted).
    flops = 2 * B * Nq * (D * HK + Nkv * (HK + HV) + HV * D)
    transcendentals = B * n_head * Nq * Nkv + B * Nq * (n_head + 1)
    bytes_accessed = (4 * B * Nq * D                        # q in (f32)
                      + cd_bytes * B * Nkv * (HK + HV)      # K/V proj, once per b
                      + cd_bytes * (D * HK + HV * D)        # weights, once
                      + 4 * 2 * D                           # LN params
                      + jnp.dtype(out_dtype).itemsize * B * Nq * D)  # out

    out = pl.pallas_call(
        kernel,
        out_shape=jax.ShapeDtypeStruct((B, Nq, D), out_dtype),
        grid_spec=pltpu.PrefetchScalarGridSpec(
            num_scalar_prefetch=0,
            grid=(B, NT),
            in_specs=[
                # q tile: tiled along tokens
                pl.BlockSpec((1, TM, D), lambda b, t: (b, t, 0)),
                # precomputed K/V projections: resident across the q-tile axis
                pl.BlockSpec((1, Nkv, HK), lambda b, t: (b, 0, 0)),
                pl.BlockSpec((1, Nkv, HV), lambda b, t: (b, 0, 0)),
                # weights / LN params: constant index maps -> VMEM-resident
                pl.BlockSpec((D, HK), lambda b, t: (0, 0)),
                pl.BlockSpec((HV, D), lambda b, t: (0, 0)),
                pl.BlockSpec((1, D), lambda b, t: (0, 0)),
                pl.BlockSpec((1, D), lambda b, t: (0, 0)),
            ],
            out_specs=pl.BlockSpec((1, TM, D), lambda b, t: (b, t, 0)),
        ),
        compiler_params=pltpu.CompilerParams(
            dimension_semantics=("parallel", "parallel"),
            vmem_limit_bytes=vmem_budget,
        ),
        cost_estimate=pl.CostEstimate(
            flops=int(flops),
            transcendentals=int(transcendentals),
            bytes_accessed=int(bytes_accessed),
        ),
    )(q, k_proj, v_proj, wq_t, wfc_t, gamma, beta)

    return out


def _reference(q, k, v, p, n_head, d_k, d_v):
    """Pure-JAX reference of the same semantics (for sanity checking)."""
    B, Nq, D = q.shape

    Q = q @ p["w_qs"].T
    K = k @ p["w_ks"].T
    V = v @ p["w_vs"].T

    def split_heads(x, dh):
        b, n, _ = x.shape
        return x.reshape(b, n, n_head, dh).transpose(0, 2, 1, 3)   # (B,H,n,dh)

    Qh, Kh, Vh = split_heads(Q, d_k), split_heads(K, d_k), split_heads(V, d_v)
    s = jnp.einsum('bhqd,bhkd->bhqk', Qh / (d_k ** 0.5), Kh)
    a = jax.nn.softmax(s, axis=-1)
    ctx = jnp.einsum('bhqk,bhkd->bhqd', a, Vh)
    ctx = ctx.transpose(0, 2, 1, 3).reshape(B, Nq, n_head * d_v)

    y = jnp.maximum(ctx @ p["fc"].T, 0.0) + q          # relu + residual (eval)
    mu = jnp.mean(y, axis=-1, keepdims=True)
    var = jnp.mean((y - mu) ** 2, axis=-1, keepdims=True)
    return (y - mu) / jnp.sqrt(var + 1e-6) * p["ln_gamma"] + p["ln_beta"]


def make_params(key, d_model, n_head, d_k, d_v):
    k1, k2, k3, k4, k5, k6 = jax.random.split(key, 6)
    lim_in = 1.0 / jnp.sqrt(d_model)
    lim_fc = 1.0 / jnp.sqrt(n_head * d_v)
    return {
        "w_qs": jax.random.uniform(k1, (n_head * d_k, d_model), jnp.float32,
                                   -lim_in, lim_in),
        "w_ks": jax.random.uniform(k2, (n_head * d_k, d_model), jnp.float32,
                                   -lim_in, lim_in),
        "w_vs": jax.random.uniform(k3, (n_head * d_v, d_model), jnp.float32,
                                   -lim_in, lim_in),
        "fc": jax.random.uniform(k4, (d_model, n_head * d_v), jnp.float32,
                                 -lim_fc, lim_fc),
        # LayerNorm affine params (randomized slightly to exercise the path;
        # PyTorch default init is gamma=1, beta=0)
        "ln_gamma": 1.0 + 0.1 * jax.random.normal(k5, (d_model,), jnp.float32),
        "ln_beta": 0.1 * jax.random.normal(k6, (d_model,), jnp.float32),
    }


if __name__ == "__main__":
    key = jax.random.PRNGKey(0)
    kq, kk, kv, kp = jax.random.split(key, 4)

    B, N, d_model = 2, 8, 32
    n_head, d_k, d_v = 4, 8, 8

    q = jax.random.normal(kq, (B, N, d_model), jnp.float32)
    k = jax.random.normal(kk, (B, N, d_model), jnp.float32)
    v = jax.random.normal(kv, (B, N, d_model), jnp.float32)
    params = make_params(kp, d_model, n_head, d_k, d_v)

    # fp32 compute for the correctness check; pass compute_dtype=jnp.bfloat16
    # (and out_dtype=jnp.bfloat16) for production throughput on v6e/v7x.
    out = multi_head_attention(q, k, v, params,
                               n_head=n_head, d_k=d_k, d_v=d_v,
                               compute_dtype=jnp.float32)
    out = jax.block_until_ready(out)

    ref = _reference(q, k, v, params, n_head, d_k, d_v)
    assert out.shape == (B, N, d_model)
    # Tolerance accounts for the EUP approx-reciprocal softmax normalization.
    assert jnp.allclose(out, ref, atol=2e-3, rtol=2e-3), "mismatch vs reference"

    print("KERNEL_OK")
</pallas_src>

<mosaic_0001>
module attributes {stable_mosaic.version = 11 : i64} {
  func.func @_mha_kernel(%arg0: i32, %arg1: i32, %arg2: memref<1x8x32xf32, #tpu.memory_space<vmem>>, %arg3: memref<1x8x32xf32, #tpu.memory_space<vmem>>, %arg4: memref<1x8x32xf32, #tpu.memory_space<vmem>>, %arg5: memref<32x32xf32, #tpu.memory_space<vmem>>, %arg6: memref<32x32xf32, #tpu.memory_space<vmem>>, %arg7: memref<1x32xf32, #tpu.memory_space<vmem>>, %arg8: memref<1x32xf32, #tpu.memory_space<vmem>>, %arg9: memref<1x8x32xf32, #tpu.memory_space<vmem>>) attributes {dimension_semantics = [#tpu.dimension_semantics<parallel>, #tpu.dimension_semantics<parallel>], iteration_bounds = array<i64: 2, 1>, scalar_prefetch = 0 : i64, scratch_operands = 0 : i64, tpu.core_type = #tpu.core_type<tc>, window_params = [{transform_indices = @transform_0, window_bounds = array<i64: 1, 8, 32>}, {transform_indices = @transform_1, window_bounds = array<i64: 1, 8, 32>}, {transform_indices = @transform_2, window_bounds = array<i64: 1, 8, 32>}, {pipeline_mode = #tpu.pipeline_mode<synchronous>, transform_indices = @transform_3, window_bounds = array<i64: 32, 32>}, {pipeline_mode = #tpu.pipeline_mode<synchronous>, transform_indices = @transform_4, window_bounds = array<i64: 32, 32>}, {pipeline_mode = #tpu.pipeline_mode<synchronous>, transform_indices = @transform_5, window_bounds = array<i64: 1, 32>}, {pipeline_mode = #tpu.pipeline_mode<synchronous>, transform_indices = @transform_6, window_bounds = array<i64: 1, 32>}, {transform_indices = @transform_7, window_bounds = array<i64: 1, 8, 32>}]} {
    %c0 = arith.constant 0 : index
    %c0_0 = arith.constant 0 : index
    %c0_1 = arith.constant 0 : index
    %0 = vector.load %arg2[%c0, %c0_0, %c0_1] : memref<1x8x32xf32, #tpu.memory_space<vmem>>, vector<1x8x32xf32>
    %1 = vector.shape_cast %0 : vector<1x8x32xf32> to vector<8x32xf32>
    %c0_2 = arith.constant 0 : index
    %c0_3 = arith.constant 0 : index
    %2 = vector.load %arg5[%c0_2, %c0_3] : memref<32x32xf32, #tpu.memory_space<vmem>>, vector<32x32xf32>
    %cst = arith.constant dense<0.000000e+00> : vector<8x32xf32>
    %3 = tpu.matmul %1, %2, %cst {dimension_numbers = #tpu.dot_dimension_numbers<[1], [0], [0], [1], [0, 0, 1, 1], [], []>} : vector<8x32xf32>, vector<32x32xf32>, vector<8x32xf32> -> vector<8x32xf32>
    %c0_4 = arith.constant 0 : index
    %c0_5 = arith.constant 0 : index
    %c0_6 = arith.constant 0 : index
    %4 = vector.load %arg3[%c0_4, %c0_5, %c0_6] : memref<1x8x32xf32, #tpu.memory_space<vmem>>, vector<1x8x32xf32>
    %5 = vector.shape_cast %4 : vector<1x8x32xf32> to vector<8x32xf32>
    %c0_7 = arith.constant 0 : index
    %c0_8 = arith.constant 0 : index
    %c0_9 = arith.constant 0 : index
    %6 = vector.load %arg4[%c0_7, %c0_8, %c0_9] : memref<1x8x32xf32, #tpu.memory_space<vmem>>, vector<1x8x32xf32>
    %7 = vector.shape_cast %6 : vector<1x8x32xf32> to vector<8x32xf32>
    %8 = vector.extract_strided_slice %3 {offsets = [0, 0], sizes = [8, 8], strides = [1, 1]} : vector<8x32xf32> to vector<8x8xf32>
    %9 = vector.extract_strided_slice %5 {offsets = [0, 0], sizes = [8, 8], strides = [1, 1]} : vector<8x32xf32> to vector<8x8xf32>
    %10 = vector.extract_strided_slice %7 {offsets = [0, 0], sizes = [8, 8], strides = [1, 1]} : vector<8x32xf32> to vector<8x8xf32>
    %cst_10 = arith.constant dense<0.000000e+00> : vector<8x8xf32>
    %11 = tpu.matmul %8, %9, %cst_10 {dimension_numbers = #tpu.dot_dimension_numbers<[1], [1], [0], [0], [0, 0, 1, 0], [], []>} : vector<8x8xf32>, vector<8x8xf32>, vector<8x8xf32> -> vector<8x8xf32>
    %cst_11 = arith.constant dense<0xFF800000> : vector<8xf32>
    %12 = vector.multi_reduction <maximumf>, %11, %cst_11 [1] : vector<8x8xf32> to vector<8xf32>
    %13 = vector.shape_cast %12 : vector<8xf32> to vector<8x1xf32>
    %14 = vector.broadcast %13 : vector<8x1xf32> to vector<8x8xf32>
    %15 = arith.subf %11, %14 : vector<8x8xf32>
    %16 = math.exp %15 : vector<8x8xf32>
    %cst_12 = arith.constant dense<0.000000e+00> : vector<8xf32>
    %17 = vector.multi_reduction <add>, %16, %cst_12 [1] : vector<8x8xf32> to vector<8xf32>
    %18 = vector.shape_cast %17 : vector<8xf32> to vector<8x1xf32>
    %cst_13 = arith.constant dense<0.000000e+00> : vector<8x8xf32>
    %19 = tpu.matmul %16, %10, %cst_13 {dimension_numbers = #tpu.dot_dimension_numbers<[1], [0], [0], [1], [0, 0, 1, 1], [], []>} : vector<8x8xf32>, vector<8x8xf32>, vector<8x8xf32> -> vector<8x8xf32>
    %20 = tpu.reciprocal %18 {approx = true} : vector<8x1xf32> -> vector<8x1xf32>
    %21 = vector.broadcast %20 : vector<8x1xf32> to vector<8x8xf32>
    %22 = arith.mulf %19, %21 : vector<8x8xf32>
    %23 = vector.extract_strided_slice %3 {offsets = [0, 8], sizes = [8, 8], strides = [1, 1]} : vector<8x32xf32> to vector<8x8xf32>
    %24 = vector.extract_strided_slice %5 {offsets = [0, 8], sizes = [8, 8], strides = [1, 1]} : vector<8x32xf32> to vector<8x8xf32>
    %25 = vector.extract_strided_slice %7 {offsets = [0, 8], sizes = [8, 8], strides = [1, 1]} : vector<8x32xf32> to vector<8x8xf32>
    %cst_14 = arith.constant dense<0.000000e+00> : vector<8x8xf32>
    %26 = tpu.matmul %23, %24, %cst_14 {dimension_numbers = #tpu.dot_dimension_numbers<[1], [1], [0], [0], [0, 0, 1, 0], [], []>} : vector<8x8xf32>, vector<8x8xf32>, vector<8x8xf32> -> vector<8x8xf32>
    %cst_15 = arith.constant dense<0xFF800000> : vector<8xf32>
    %27 = vector.multi_reduction <maximumf>, %26, %cst_15 [1] : vector<8x8xf32> to vector<8xf32>
    %28 = vector.shape_cast %27 : vector<8xf32> to vector<8x1xf32>
    %29 = vector.broadcast %28 : vector<8x1xf32> to vector<8x8xf32>
    %30 = arith.subf %26, %29 : vector<8x8xf32>
    %31 = math.exp %30 : vector<8x8xf32>
    %cst_16 = arith.constant dense<0.000000e+00> : vector<8xf32>
    %32 = vector.multi_reduction <add>, %31, %cst_16 [1] : vector<8x8xf32> to vector<8xf32>
    %33 = vector.shape_cast %32 : vector<8xf32> to vector<8x1xf32>
    %cst_17 = arith.constant dense<0.000000e+00> : vector<8x8xf32>
    %34 = tpu.matmul %31, %25, %cst_17 {dimension_numbers = #tpu.dot_dimension_numbers<[1], [0], [0], [1], [0, 0, 1, 1], [], []>} : vector<8x8xf32>, vector<8x8xf32>, vector<8x8xf32> -> vector<8x8xf32>
    %35 = tpu.reciprocal %33 {approx = true} : vector<8x1xf32> -> vector<8x1xf32>
    %36 = vector.broadcast %35 : vector<8x1xf32> to vector<8x8xf32>
    %37 = arith.mulf %34, %36 : vector<8x8xf32>
    %38 = vector.extract_strided_slice %3 {offsets = [0, 16], sizes = [8, 8], strides = [1, 1]} : vector<8x32xf32> to vector<8x8xf32>
    %39 = vector.extract_strided_slice %5 {offsets = [0, 16], sizes = [8, 8], strides = [1, 1]} : vector<8x32xf32> to vector<8x8xf32>
    %40 = vector.extract_strided_slice %7 {offsets = [0, 16], sizes = [8, 8], strides = [1, 1]} : vector<8x32xf32> to vector<8x8xf32>
    %cst_18 = arith.constant dense<0.000000e+00> : vector<8x8xf32>
    %41 = tpu.matmul %38, %39, %cst_18 {dimension_numbers = #tpu.dot_dimension_numbers<[1], [1], [0], [0], [0, 0, 1, 0], [], []>} : vector<8x8xf32>, vector<8x8xf32>, vector<8x8xf32> -> vector<8x8xf32>
    %cst_19 = arith.constant dense<0xFF800000> : vector<8xf32>
    %42 = vector.multi_reduction <maximumf>, %41, %cst_19 [1] : vector<8x8xf32> to vector<8xf32>
    %43 = vector.shape_cast %42 : vector<8xf32> to vector<8x1xf32>
    %44 = vector.broadcast %43 : vector<8x1xf32> to vector<8x8xf32>
    %45 = arith.subf %41, %44 : vector<8x8xf32>
    %46 = math.exp %45 : vector<8x8xf32>
    %cst_20 = arith.constant dense<0.000000e+00> : vector<8xf32>
    %47 = vector.multi_reduction <add>, %46, %cst_20 [1] : vector<8x8xf32> to vector<8xf32>
    %48 = vector.shape_cast %47 : vector<8xf32> to vector<8x1xf32>
    %cst_21 = arith.constant dense<0.000000e+00> : vector<8x8xf32>
    %49 = tpu.matmul %46, %40, %cst_21 {dimension_numbers = #tpu.dot_dimension_numbers<[1], [0], [0], [1], [0, 0, 1, 1], [], []>} : vector<8x8xf32>, vector<8x8xf32>, vector<8x8xf32> -> vector<8x8xf32>
    %50 = tpu.reciprocal %48 {approx = true} : vector<8x1xf32> -> vector<8x1xf32>
    %51 = vector.broadcast %50 : vector<8x1xf32> to vector<8x8xf32>
    %52 = arith.mulf %49, %51 : vector<8x8xf32>
    %53 = vector.extract_strided_slice %3 {offsets = [0, 24], sizes = [8, 8], strides = [1, 1]} : vector<8x32xf32> to vector<8x8xf32>
    %54 = vector.extract_strided_slice %5 {offsets = [0, 24], sizes = [8, 8], strides = [1, 1]} : vector<8x32xf32> to vector<8x8xf32>
    %55 = vector.extract_strided_slice %7 {offsets = [0, 24], sizes = [8, 8], strides = [1, 1]} : vector<8x32xf32> to vector<8x8xf32>
    %cst_22 = arith.constant dense<0.000000e+00> : vector<8x8xf32>
    %56 = tpu.matmul %53, %54, %cst_22 {dimension_numbers = #tpu.dot_dimension_numbers<[1], [1], [0], [0], [0, 0, 1, 0], [], []>} : vector<8x8xf32>, vector<8x8xf32>, vector<8x8xf32> -> vector<8x8xf32>
    %cst_23 = arith.constant dense<0xFF800000> : vector<8xf32>
    %57 = vector.multi_reduction <maximumf>, %56, %cst_23 [1] : vector<8x8xf32> to vector<8xf32>
    %58 = vector.shape_cast %57 : vector<8xf32> to vector<8x1xf32>
    %59 = vector.broadcast %58 : vector<8x1xf32> to vector<8x8xf32>
    %60 = arith.subf %56, %59 : vector<8x8xf32>
    %61 = math.exp %60 : vector<8x8xf32>
    %cst_24 = arith.constant dense<0.000000e+00> : vector<8xf32>
    %62 = vector.multi_reduction <add>, %61, %cst_24 [1] : vector<8x8xf32> to vector<8xf32>
    %63 = vector.shape_cast %62 : vector<8xf32> to vector<8x1xf32>
    %cst_25 = arith.constant dense<0.000000e+00> : vector<8x8xf32>
    %64 = tpu.matmul %61, %55, %cst_25 {dimension_numbers = #tpu.dot_dimension_numbers<[1], [0], [0], [1], [0, 0, 1, 1], [], []>} : vector<8x8xf32>, vector<8x8xf32>, vector<8x8xf32> -> vector<8x8xf32>
    %65 = tpu.reciprocal %63 {approx = true} : vector<8x1xf32> -> vector<8x1xf32>
    %66 = vector.broadcast %65 : vector<8x1xf32> to vector<8x8xf32>
    %67 = arith.mulf %64, %66 : vector<8x8xf32>
    %68 = tpu.concatenate %22, %37, %52, %67 in 1 : vector<8x8xf32>, vector<8x8xf32>, vector<8x8xf32>, vector<8x8xf32> -> vector<8x32xf32>
    %c0_26 = arith.constant 0 : index
    %c0_27 = arith.constant 0 : index
    %69 = vector.load %arg6[%c0_26, %c0_27] : memref<32x32xf32, #tpu.memory_space<vmem>>, vector<32x32xf32>
    %cst_28 = arith.constant dense<0.000000e+00> : vector<8x32xf32>
    %70 = tpu.matmul %68, %69, %cst_28 {dimension_numbers = #tpu.dot_dimension_numbers<[1], [0], [0], [1], [0, 0, 1, 1], [], []>} : vector<8x32xf32>, vector<32x32xf32>, vector<8x32xf32> -> vector<8x32xf32>
    %cst_29 = arith.constant 0.000000e+00 : f32
    %71 = vector.broadcast %cst_29 : f32 to vector<8x32xf32>
    %72 = arith.maximumf %70, %71 : vector<8x32xf32>
    %73 = arith.addf %72, %1 : vector<8x32xf32>
    %cst_30 = arith.constant dense<0.000000e+00> : vector<8xf32>
    %74 = vector.multi_reduction <add>, %73, %cst_30 [1] : vector<8x32xf32> to vector<8xf32>
    %75 = vector.shape_cast %74 : vector<8xf32> to vector<8x1xf32>
    %cst_31 = arith.constant 3.200000e+01 : f32
    %76 = vector.broadcast %cst_31 : f32 to vector<8x1xf32>
    %77 = arith.divf %75, %76 : vector<8x1xf32>
    %78 = vector.broadcast %77 : vector<8x1xf32> to vector<8x32xf32>
    %79 = arith.subf %73, %78 : vector<8x32xf32>
    %80 = arith.mulf %79, %79 : vector<8x32xf32>
    %cst_32 = arith.constant dense<0.000000e+00> : vector<8xf32>
    %81 = vector.multi_reduction <add>, %80, %cst_32 [1] : vector<8x32xf32> to vector<8xf32>
    %82 = vector.shape_cast %81 : vector<8xf32> to vector<8x1xf32>
    %cst_33 = arith.constant 3.200000e+01 : f32
    %83 = vector.broadcast %cst_33 : f32 to vector<8x1xf32>
    %84 = arith.divf %82, %83 : vector<8x1xf32>
    %cst_34 = arith.constant 9.99999997E-7 : f32
    %85 = vector.broadcast %cst_34 : f32 to vector<8x1xf32>
    %86 = arith.addf %84, %85 : vector<8x1xf32>
    %87 = math.rsqrt %86 : vector<8x1xf32>
    %88 = vector.broadcast %87 : vector<8x1xf32> to vector<8x32xf32>
    %89 = arith.mulf %79, %88 : vector<8x32xf32>
    %c0_35 = arith.constant 0 : index
    %c0_36 = arith.constant 0 : index
    %90 = vector.load %arg7[%c0_35, %c0_36] : memref<1x32xf32, #tpu.memory_space<vmem>>, vector<1x32xf32>
    %91 = vector.broadcast %90 : vector<1x32xf32> to vector<8x32xf32>
    %92 = arith.mulf %89, %91 : vector<8x32xf32>
    %c0_37 = arith.constant 0 : index
    %c0_38 = arith.constant 0 : index
    %93 = vector.load %arg8[%c0_37, %c0_38] : memref<1x32xf32, #tpu.memory_space<vmem>>, vector<1x32xf32>
    %94 = vector.broadcast %93 : vector<1x32xf32> to vector<8x32xf32>
    %95 = arith.addf %92, %94 : vector<8x32xf32>
    %c0_39 = arith.constant 0 : index
    %c0_40 = arith.constant 0 : index
    %c0_41 = arith.constant 0 : index
    %96 = vector.load %arg9[%c0_39, %c0_40, %c0_41] : memref<1x8x32xf32, #tpu.memory_space<vmem>>, vector<1x8x32xf32>
    %97 = vector.shape_cast %96 : vector<1x8x32xf32> to vector<8x32xf32>
    %98 = vector.shape_cast %95 : vector<8x32xf32> to vector<1x8x32xf32>
    tpu.vector_store %arg9[%c0_39, %c0_40, %c0_41], %98 {strides = array<i32>} : memref<1x8x32xf32, #tpu.memory_space<vmem>>, vector<1x8x32xf32>,
    return
  }
  func.func @transform_0(%arg0: i32, %arg1: i32) -> (i32, i32, i32) {
    %c0_i32 = arith.constant 0 : i32
    %c0_i32_0 = arith.constant 0 : i32
    return %arg0, %arg1, %c0_i32 : i32, i32, i32
  }
  func.func @transform_1(%arg0: i32, %arg1: i32) -> (i32, i32, i32) {
    %c0_i32 = arith.constant 0 : i32
    %c0_i32_0 = arith.constant 0 : i32
    %c0_i32_1 = arith.constant 0 : i32
    return %arg0, %c0_i32, %c0_i32_0 : i32, i32, i32
  }
  func.func @transform_2(%arg0: i32, %arg1: i32) -> (i32, i32, i32) {
    %c0_i32 = arith.constant 0 : i32
    %c0_i32_0 = arith.constant 0 : i32
    %c0_i32_1 = arith.constant 0 : i32
    return %arg0, %c0_i32, %c0_i32_0 : i32, i32, i32
  }
  func.func @transform_3(%arg0: i32, %arg1: i32) -> (i32, i32) {
    %c0_i32 = arith.constant 0 : i32
    %c0_i32_0 = arith.constant 0 : i32
    %c0_i32_1 = arith.constant 0 : i32
    return %c0_i32, %c0_i32_0 : i32, i32
  }
  func.func @transform_4(%arg0: i32, %arg1: i32) -> (i32, i32) {
    %c0_i32 = arith.constant 0 : i32
    %c0_i32_0 = arith.constant 0 : i32
    %c0_i32_1 = arith.constant 0 : i32
    return %c0_i32, %c0_i32_0 : i32, i32
  }
  func.func @transform_5(%arg0: i32, %arg1: i32) -> (i32, i32) {
    %c0_i32 = arith.constant 0 : i32
    %c0_i32_0 = arith.constant 0 : i32
    %c0_i32_1 = arith.constant 0 : i32
    return %c0_i32, %c0_i32_0 : i32, i32
  }
  func.func @transform_6(%arg0: i32, %arg1: i32) -> (i32, i32) {
    %c0_i32 = arith.constant 0 : i32
    %c0_i32_0 = arith.constant 0 : i32
    %c0_i32_1 = arith.constant 0 : i32
    return %c0_i32, %c0_i32_0 : i32, i32
  }
  func.func @transform_7(%arg0: i32, %arg1: i32) -> (i32, i32, i32) {
    %c0_i32 = arith.constant 0 : i32
    %c0_i32_0 = arith.constant 0 : i32
    return %arg0, %arg1, %c0_i32 : i32, i32, i32
  }
}

</mosaic_0001>

<bundles_post_ra>
// kernel: tpu_custom_call.1
= control target key start
LH: loop header
LB: loop body
LE: loop exit
PB: predicated region body
PF: predicated region fallthrough
CT: control target
= control target key end

     0   :  { %s1648_s0 = inlined_call_operand.hbm [shape: f32[2,8,32], index: 0, kind: input, shape index: {}]   ;;  %s1649_s1 = inlined_call_operand.hbm [shape: f32[2,8,32], index: 1, kind: input, shape index: {}]   ;;  %s1650_s2 = inlined_call_operand.hbm [shape: f32[2,8,32], index: 2, kind: input, shape index: {}]   ;;  %s1651_s3 = inlined_call_operand.hbm [shape: f32[32,32], index: 3, kind: input, shape index: {}]   ;;  %s1652_s4 = inlined_call_operand.hbm [shape: f32[32,32], index: 4, kind: input, shape index: {}]   ;;  %s1653_s5 = inlined_call_operand.vmem [shape: f32[1,32], index: 5, kind: input, shape index: {}]   ;;  %s1654_s6 = inlined_call_operand.vmem [shape: f32[1,32], index: 6, kind: input, shape index: {}]   ;;  %s1655_s7 = inlined_call_operand.hbm [shape: f32[2,8,32], index: 7, kind: output, shape index: {}]  }
   0x1   :  { %1667 = sst [smem:[#allocation24_spill]] %s1649_s1 }
   0x2   :  { %1668 = sst [smem:[#allocation25_spill]] %s1651_s3 }
   0x3   :  { %1669 = sst [smem:[#allocation26_spill]] %s1652_s4 }
   0x4   :  { %1670 = sst [smem:[#allocation27_spill]] %s1654_s6 }
   0x5   :  { %12 = vsyncpa [#allocation3], 0 }
   0x6   :  { %14 = vsyncpa [#allocation3 + $0x1], 0 }
   0x7   :  { %15 = vsyncpa [#allocation6], 0 }
   0x8   :  { %17 = vsyncpa [#allocation6 + $0x1], 0 }
   0x9   :  { %18 = vsyncpa [#allocation9], 0 }
   0xa   :  { %19 = vsyncpa [#allocation4], 0 }
   0xb   :  { %21 = vsyncpa [#allocation4 + $0x1], 0  ;;  %s1408_s24 = smov 0   ;;  %s1410_s25 = smov 0  }
   0xc   :  { %s1412_s26 = smov 0   ;;  %s1414_s27 = smov 0  }
   0xd   :  { %s1416_s28 = smov 0   ;;  %s1418_s29 = smov 0  }
   0xe LB: > { %1671 = sst [smem:[#allocation16_spill]] %s1335_s24  ;;  %s1439_s30 = sadd.s32 4294967295, %s1355_s29   ;;  %s1355_s29 = sphi %s1418_s29, %s27_s29   ;;  %s1351_s28 = sphi %s1416_s28, %s1700_s28   ;;  %s1347_s27 = sphi %s1414_s27, %s1699_s27   ;;  %s1343_s26 = sphi %s1412_s26, %s1698_s26   ;;  %s1339_s25 = sphi %s1410_s25, %s1702_s25   ;;  %s1335_s24 = sphi %s1408_s24, %s1701_s24  }
   0xf   : > { %1672 = sst [smem:[#allocation17_spill]] %s1343_s26  ;;  %p956_p0 = scmp.ge.s32.totalorder %s1355_s29, 1 }
  0x10   : > { %1673 = sst [smem:[#allocation18_spill]] %s1351_s28  ;;  %p62_p1 = scmp.eq.s32.totalorder %s1439_s30, 0 }
  0x11   : > { %1674 = sst [smem:[#allocation19_spill]] %s1355_s29  ;;  %p236_p2 = scmp.lt.s32.totalorder %s1355_s29, 3 }
  0x12   : > { %s1675_s3 = sld [smem:[#allocation25_spill]]  ;;  %s1357_s12 = smov [#allocation8]  }
  0x13   : > { %p1447_p3 = pnand %p956_p0, %p236_p2  ;;  %s249_s13 = sshll.u32 %s1357_s12, 4  ;;  %s250_s13 = int_to_ptr.vmem [resolvable:$true] %s249_s13 }
  0x14   : > { %s1656_s15 = smov 128   ;;  %s1657_s16 = smov 8  }
  0x15   : > { %p1007_p4 = pneg %p1447_p3  ;;  %s955_s17 = sadd.s32 4294967294, %s1355_s29  }
  0x16   : > { %s39_s18 = sadd.s32 1, %s1351_s28  ;;  %s48_s19 = sadd.s32 1, %s1343_s26 }
  0x17   : > { %p1455_p5 = pnand %p1007_p4, %p62_p1  ;;  %p41_p7 = scmp.ge.s32.totalorder %s39_s18, 2 }
  0x18   : > { %s247_s10 = sshll.u32 %s1675_s3, 4  ;;  %p55_p8 = scmp.ne.s32.totalorder %s1343_s26, %s1339_s25  ;;  %s248_s10 = int_to_ptr.hbm [resolvable:$true] %s247_s10 }
  0x19   : > { %1010 = dma.hbm_to_vmem [thread:$0]  (!%p1455_p5), %s248_s10, 512, %s250_s13, [#allocation9], %s1656_s15, %s1656_s15, %s1657_s16  }
  0x1a   : > { %p56_p9 = scmp.eq.s32.totalorder %s1355_s29, 0  ;;  %p61_p10 = scmp.ne.s32.totalorder %s1339_s25, %s1335_s24 }
  0x1b   : > { %s1704_s18 = smov (%p41_p7, %s39_s18), 0  ;;  %p223_p13 = scmp.eq.s32.totalorder %s1439_s30, 1 }
  0x1c   : > { %1678 = sst [smem:[#allocation20_spill]] %s1704_s18  ;;  %p1475_p11 = por %p56_p9, %p55_p8 }
  0x1d   : > { %p1481_p12 = por %p62_p1, %p61_p10  ;;  %s43_s22 = ssub.s32 %s1351_s28, %s1704_s18 }
  0x1e   : > { %p46_p0 = scmp.eq.s32.totalorder %s43_s22, 0  ;;  %p229_p2 = scmp.eq.s32.totalorder %s955_s17, 1 }
  0x1f   : > { %p1488_p4 = por %p223_p13, %p55_p8  ;;  %p1030_p7 = scmp.lt.s32.totalorder %s1355_s29, 2 }
  0x20   : > { %s1494_s8 = scalar_select %p46_p0, %s1343_s26, %s48_s19  }
  0x21   : > { %s1681_s23 = scalar_select %p1488_p4, 1, 0 }
  0x22   : > { %1683 = sst [smem:[#allocation22_spill]] %s1494_s8  ;;  %p1496_p9 = por %p229_p2, %p61_p10 }
  0x23   : > { %1682 = sst [smem:[#allocation21_spill]] %s1681_s23  ;;  %s283_s10 = sand.u32 1, %s1343_s26  }
  0x24   : > { %s1684_s9 = scalar_select %p1496_p9, 1, 0 }
  0x25   : > { %s1501_s12 = sshll.u32 %s283_s10, 3  ;;  %s961_s13 = sshll.u32 %s1351_s28, 3 }
  0x26   : > { %1685 = sst [smem:[#allocation23_spill]] %s1684_s9  ;;  %p1506_p6 = pnand %p1030_p7, %p1475_p11 }
  0x27   : > { %s303_s22 = sand.u32 1, %s1355_s29   ;;  %s1687_s1 = sld [smem:[#allocation24_spill]] }
  0x28   : > { %s307_s18 = scalar_lea.vmem [#allocation5], %s1501_s12  ;;  %s304_s28 = scalar_lea.sflag [#allocation6], %s303_s22 }
  0x29   : > { %s315_s8 = sshll.u32 %s307_s18, 4  ;;  %s1688_s4 = sld [smem:[#allocation26_spill]]  ;;  %s316_s8 = int_to_ptr.vmem [resolvable:$true] %s315_s8 }
  0x2a   : > { %s1360_s29 = smov [#allocation10]   ;;  %s1689_s15 = smov 8  }
  0x2b   : > { %s263_s24 = sshll.u32 %s1360_s29, 4  ;;  %s292_s22 = scalar_lea.hbm %s1648_s0, %s961_s13  ;;  %s264_s24 = int_to_ptr.vmem [resolvable:$true] %s263_s24 }
  0x2c   : > { %s284_s26 = scalar_lea.sflag [#allocation3], %s283_s10  ;;  %s330_s14 = scalar_lea.hbm %s1650_s2, %s961_s13 }
  0x2d   : > { %s311_s16 = scalar_lea.hbm %s1687_s1, %s961_s13  ;;  %s326_s6 = scalar_lea.vmem [#allocation7], %s1501_s12 }
  0x2e   : > { %s313_s3 = sshll.u32 %s311_s16, 4  ;;  %s1690_s16 = smov 128   ;;  %s314_s3 = int_to_ptr.hbm [resolvable:$true] %s313_s3 }
  0x2f   : > { %1020 = dma.hbm_to_vmem [thread:$0]  (!%p1506_p6), %s314_s3, 128, %s316_s8, %s304_s28  }
  0x30   : > { %s261_s9 = sshll.u32 %s1688_s4, 4  ;;  %s294_s3 = sshll.u32 %s292_s22, 4  ;;  %s262_s9 = int_to_ptr.hbm [resolvable:$true] %s261_s9  ;;  %s295_s3 = int_to_ptr.hbm [resolvable:$true] %s294_s3 }
  0x31   : > { %1013 = dma.hbm_to_vmem [thread:$0]  (!%p1455_p5), %s262_s9, 512, %s264_s24, [#allocation9], %s1690_s16, %s1690_s16, %s1689_s15  }
  0x32   : > { %s287_s8 = scalar_lea.vmem [#allocation2], %s1501_s12  ;;  %s332_s4 = sshll.u32 %s330_s14, 4  ;;  %s333_s4 = int_to_ptr.hbm [resolvable:$true] %s332_s4 }
  0x33   : > { %s296_s1 = sshll.u32 %s287_s8, 4  ;;  %s334_s23 = sshll.u32 %s326_s6, 4  ;;  %s297_s1 = int_to_ptr.vmem [resolvable:$true] %s296_s1  ;;  %s335_s23 = int_to_ptr.vmem [resolvable:$true] %s334_s23 }
  0x34   : > { %1017 = dma.hbm_to_vmem [thread:$0]  (!%p1506_p6), %s295_s3, 128, %s297_s1, %s284_s26  }
  0x35   : > { %1023 = dma.hbm_to_vmem [thread:$0]  (!%p1506_p6), %s333_s4, 128, %s335_s23, %s304_s28  }
  0x36   : > { %343 = sbr.rel (%p1447_p3) target bundleno = 1240 (0x4d8), region = 48  ;;  %s1540_s24 = sand.u32 (!%p1447_p3), 1, %s1339_s25  }
  0x37   : > { %s1543_s1 = sshll.u32 (!%p1447_p3), %s1540_s24, 3  ;;  %s346_s9 = scalar_lea.sflag (!%p1447_p3), [#allocation3], %s1540_s24 }
  0x38   : > { %s349_s10 = scalar_lea.vmem (!%p1447_p3), [#allocation2], %s1543_s1 }
  0x3b   : > { %1318 = dma.done.wait (%p1481_p12), %s346_s9, 128  }
  0x3c   : > { %1320 = vsyncadd (%p1481_p12), %s346_s9, 4294967168  ;;  %s355_s4 = sand.u32 1, %s1439_s30   ;;  %s359_s28 = scalar_lea.vmem [#allocation5], %s1543_s1 }
  0x3d   : > { %s356_s6 = scalar_lea.sflag [#allocation6], %s355_s4 }
  0x3e   : > { %1322 = dma.done.wait (%p1481_p12), %s356_s6, 256  }
  0x3f   : > { %1324 = vsyncadd (%p1481_p12), %s356_s6, 4294967040  ;;  %s369_s11 = scalar_lea.vmem [#allocation7], %s1543_s1 }
  0x40   : > { %1326 = dma.done.wait (%p62_p1), [#allocation9], 1024  }
  0x41   : > { %1328 = vsyncadd (%p62_p1), [#allocation9], 4294966272  ;;  %v425_v0 = vld [vmem:[#allocation8 + $0x18] sm:$0xff]  ;;  %v424_v1 = vld [vmem:[#allocation8 + $0x10] sm:$0xff]  ;;  %vm452_vm0 = vcmask 64512   ;;  %s1361_s23 = smov 112  }
  0x42   : > { %442 = vmatpush.msra.mxu0 %v425_v0  ;;  %v450_v2 = vld [vmem:[%s359_s28] sm:$0xff]  ;;  %s1362_s12 = smov 120   ;;  %v1565_v5 = vld [vmem:[%s349_s10] sm:$0xff]  ;;  %vm426_vm1 = vcmask 261120   ;;  %s1363_s30 = smov 104   ;;  %vm722_vm2 = vcmask 130048  }
  0x43   : > { %v423_v3 = vld [vmem:[#allocation8 + $0x8] sm:$0xff]  ;;  %581 = vrot.lane.b32.xlu1 %v450_v2, %s1361_s23  ;;  %515 = vrot.lane.b32.xlu0 %v450_v2, %s1362_s12  ;;  %v422_v4 = vld [vmem:[#allocation8] sm:$0xff]  ;;  %v451_v16 = vld [vmem:[%s369_s11] sm:$0xff]  ;;  %s1364_s21 = smov 8   ;;  %s1365_s13 = smov 24   ;;  %vm724_vm3 = vcmask 195584  }
  0x44   : > { %443 = vmatpush.msra.mxu0 %v424_v1  ;;  %974 = vmatpush.xpose.msk.msra.mxu1 %vm452_vm0, %v450_v2  ;;  %s1366_s17 = smov 16   ;;  %v729_v58 = vld [vmem:[#allocation10 + $0x18] sm:$0xff]  ;;  %v728_v59 = vld [vmem:[#allocation10 + $0x10] sm:$0xff]  ;;  %v727_v60 = vld [vmem:[#allocation10 + $0x8] sm:$0xff]  ;;  %s988_s15 = sshll.u32 %s1347_s27, 3 }
  0x45   : > { %506 = vmatpush.msra.mxu2 %v451_v16  ;;  %v726_v61 = vld [vmem:[#allocation10] sm:$0xff]  ;;  %s807_s3 = scalar_lea.hbm %s1655_s7, %s988_s15  ;;  %s1692_s20 = sld [smem:[#allocation27_spill]] }
  0x46   : > { %444 = vmatpush.msra.mxu0 %v423_v3  ;;  %s420_s27 = scalar_lea.vmem [#allocation11], %s1543_s1  ;;  %s811_s9 = sshll.u32 %s807_s3, 4  ;;  %s812_s9 = int_to_ptr.hbm [resolvable:$true] %s811_s9 }
  0x47   : > { %s809_s14 = sshll.u32 %s420_s27, 4  ;;  %s796_s10 = scalar_lea.sflag [#allocation4], %s1540_s24  ;;  %s810_s14 = int_to_ptr.vmem [resolvable:$true] %s809_s14 }
  0x48   : > { %445 = vmatpush.msra.mxu0 %v422_v4  ;;  %s1279_s4 = sshra.s32 %s812_s9, 4  ;;  %s1285_s1 = scalar_lea.hbm %s1655_s7, 16  ;;  %s1280_s4 = int_to_ptr.hbm [resolvable:$true] %s1279_s4 }
  0x49   : > { %973 = vmatmul.msk.f32.vlgmr.msra.gmra.mxu0 %vm426_vm1, %v1565_v5  ;;  %s1281_s6 = scalar_lea.hbm %s1280_s4, 8  ;;  %p1286_p6 = scmp.lt.s32.totalorder %s1280_s4, %s1655_s7 }
  0x4a   : > { %p1282_p1 = scmp.ne.s32.totalorder %s1280_s4, %s1281_s6  ;;  %p1287_p8 = scmp.lt.s32.totalorder %s1285_s1, %s1281_s6 }
  0x4b   : > { %646 = vrot.lane.b32.xlu1 %v450_v2, %s1363_s30 }
  0x4c   : > { %p1283_p3 = pnand %p1282_p1, %p1488_p4  ;;  %p1288_p10 = por %p1287_p8, %p1286_p6 }
  0x4e   : > { %p1284_p5 = pneg %p1283_p3 }
  0x50   : > { %p1289_p11 = pnand %p1288_p10, %p1284_p5 }
  0xb5   : > { %v582_v6 = vpop.permute.xlu1 %581  ;;  %v516_v9 = vpop.permute.xlu0 %515 }
  0xb6   : > { %980 = vmatpush.xpose.msk.msrb.mxu1 %vm452_vm0, %v582_v6  ;;  %977 = vmatpush.xpose.msk.msra.mxu3 %vm452_vm0, %v516_v9 }
  0xbd   : > { %v647_v8 = vpop.permute.xlu1 %646 }
  0xbe   : > { %983 = vmatpush.xpose.msk.msrb.mxu0 %vm452_vm0, %v647_v8 }
  0xc6   : > { %v447_v7 = vpop.f32.mrf.mxu0 }
  0xc7   : > { %579 = vrot.lane.b32.xlu2 %v447_v7, %s1361_s23  ;;  %513 = vrot.lane.b32.xlu0 %v447_v7, %s1362_s12 }
  0xc8   : > { %975 = vmatmul.msk.f32.vlgmr.msra.gmra.mxu1 %vm452_vm0, %v447_v7 }
  0xc9   : > { %745 = vmatpush.msra.mxu1 %v729_v58 }
  0xcb   : > { %746 = vmatpush.msra.mxu1 %v728_v59 }
  0xcd   : > { %747 = vmatpush.msra.mxu1 %v727_v60 }
  0xcf   : > { %644 = vrot.lane.b32.xlu2 %v447_v7, %s1363_s30  ;;  %748 = vmatpush.msra.mxu1 %v726_v61 }
 0x121   : > { %v580_v10 = vpop.permute.xlu2 %579 }
 0x122   : > { %981 = vmatmul.msk.f32.vlgmr.msrb.gmra.mxu1 %vm452_vm0, %v580_v10 }
 0x129   : > { %v645_v11 = vpop.permute.xlu2 %644 }
 0x12a   : > { %984 = vmatmul.msk.f32.vlgmr.msrb.gmra.mxu0 %vm452_vm0, %v645_v11 }
 0x139   : > { %v514_v12 = vpop.permute.xlu0 %513 }
 0x13a   : > { %978 = vmatmul.msk.f32.vlgmr.msra.gmra.mxu3 %vm452_vm0, %v514_v12  ;;  %v1367_v12 = vmov 32.0  }
 0x145   : > { %v476_v13 = vpop.f32.mrf.mxu1 }
 0x146   : > { %v479_v14 = vsel %vm452_vm0, %v476_v13, -inf }
 0x147   : > { %480 = vmax.xlane.f32.xlu0 %v479_v14 }
 0x15b   : > { %551 = vrot.lane.b32.xlu0 %v451_v16, %s1362_s12 }
 0x19f   : > { %v604_v15 = vpop.f32.mrf.mxu1 }
 0x1a0   : > { %v607_v17 = vsel %vm452_vm0, %v604_v15, -inf }
 0x1a1   : > { %608 = vmax.xlane.f32.xlu2 %v607_v17 }
 0x1a7   : > { %v669_v18 = vpop.f32.mrf.mxu0 }
 0x1a8   : > { %v672_v19 = vsel %vm452_vm0, %v669_v18, -inf }
 0x1a9   : > { %673 = vmax.xlane.f32.xlu2 %v672_v19 }
 0x1ba   : > { %v481_v20 = vpop.xlane.xlu0 %480 }
 0x1bb   : > { %v482_v21 = vsub.f32 %v476_v13, %v481_v20 }
 0x1bd   : > { %v483_v22 = vmul.f32 1.442695, %v482_v21  ;;  %v538_v23 = vpop.f32.mrf.mxu3 }
 0x1be   : > { %v541_v24 = vsel %vm452_vm0, %v538_v23, -inf }
 0x1bf   : > { %1095 = vpow2.f32 %v483_v22  ;;  %542 = vmax.xlane.f32.xlu1 %v541_v24 }
 0x1c1   : > { %681 = vrot.lane.b32.xlu2 %v451_v16, %s1363_s30 }
 0x1c5   : > { %v1096_v25 = vpop.eup %1095 }
 0x1c6   : > { %976 = vmatmul.msk.f32.vlgmr.msra.gmra.mxu2 %vm452_vm0, %v1096_v25  ;;  %v485_v43 = vsel %vm452_vm0, %v1096_v25, 0.0 }
 0x1cd   : > { %v552_v29 = vpop.permute.xlu0 %551 }
 0x1ce   : > { %572 = vmatpush.msrb.mxu2 %v552_v29 }
 0x1d8   : > { %616 = vrot.lane.b32.xlu1 %v451_v16, %s1361_s23 }
 0x214   : > { %v609_v26 = vpop.xlane.xlu2 %608 }
 0x215   : > { %v610_v27 = vsub.f32 %v604_v15, %v609_v26 }
 0x217   : > { %v611_v28 = vmul.f32 1.442695, %v610_v27 }
 0x219   : > { %1097 = vpow2.f32 %v611_v28 }
 0x21c   : > { %v674_v30 = vpop.xlane.xlu2 %673 }
 0x21d   : > { %v675_v31 = vsub.f32 %v669_v18, %v674_v30 }
 0x21f   : > { %v1098_v32 = vpop.eup %1097  ;;  %v676_v33 = vmul.f32 1.442695, %v675_v31 }
 0x220   : > { %v613_v34 = vsel %vm452_vm0, %v1098_v32, 0.0 }
 0x221   : > { %1099 = vpow2.f32 %v676_v33  ;;  %614 = vadd.xlane.f32.xlu1 %v613_v34 }
 0x224   : > { %v682_v35 = vpop.permute.xlu2 %681 }
 0x225   : > { %702 = vmatpush.msra.mxu2 %v682_v35  ;;  %v1094_v35 = vld [vmem:[%s1692_s20] ss:$0 sm:$0xff] }
 0x227   : > { %v1100_v36 = vpop.eup %1099 }
 0x228   : > { %v678_v37 = vsel %vm452_vm0, %v1100_v36, 0.0 }
 0x229   : > { %679 = vadd.xlane.f32.xlu2 %v678_v37 }
 0x232   : > { %v543_v38 = vpop.xlane.xlu1 %542 }
 0x233   : > { %v544_v39 = vsub.f32 %v538_v23, %v543_v38 }
 0x235   : > { %v545_v40 = vmul.f32 1.442695, %v544_v39 }
 0x237   : > { %1101 = vpow2.f32 %v545_v40 }
 0x23d   : > { %v1102_v41 = vpop.eup %1101 }
 0x23e   : > { %979 = vmatmul.msk.f32.vlgmr.msrb.gmra.mxu2 %vm452_vm0, %v1102_v41  ;;  %v547_v42 = vsel %vm452_vm0, %v1102_v41, 0.0 }
 0x23f   : > { %548 = vadd.xlane.f32.xlu0 %v547_v42 }
 0x246   : > { %985 = vmatmul.msk.f32.vlgmr.msra.gmra.mxu2 %vm452_vm0, %v1100_v36 }
 0x247   : > { %486 = vadd.xlane.f32.xlu0 %v485_v43 }
 0x249   : > { %v508_v46 = vpop.f32.mrf.mxu2 }
 0x24a   : > { %v617_v44 = vpop.permute.xlu1 %616 }
 0x24b   : > { %637 = vmatpush.msrb.mxu3 %v617_v44 }
 0x24c   : > { %982 = vmatmul.msk.f32.vlgmr.msrb.gmra.mxu3 %vm452_vm0, %v1098_v32  ;;  %v1093_v32 = vld [vmem:[%s1653_s5] ss:$0 sm:$0xff] }
 0x294   : > { %v615_v51 = vpop.xlane.xlu1 %614 }
 0x29c   : > { %v680_v47 = vpop.xlane.xlu2 %679 }
 0x2b2   : > { %v549_v45 = vpop.xlane.xlu0 %548 }
 0x2b3   : > { %1103 = vrcp.f32 %v549_v45 }
 0x2b4   : > { %1105 = vrcp.f32 %v680_v47 }
 0x2b5   : > { %1107 = vrcp.f32 %v615_v51 }
 0x2b9   : > { %v1104_v48 = vpop.eup %1103 }
 0x2ba   : > { %v1106_v52 = vpop.eup %1105  ;;  %v487_v62 = vpop.xlane.xlu0 %486 }
 0x2bb   : > { %v1108_v55 = vpop.eup %1107  ;;  %1109 = vrcp.f32 %v487_v62 }
 0x2bc   : > { %1111 = vrcp.f32 %v1367_v12 }
 0x2c1   : > { %v574_v49 = vpop.f32.mrf.mxu2  ;;  %v1110_v63 = vpop.eup %1109 }
 0x2c2   : > { %v578_v50 = vmul.f32 %v1104_v48, %v574_v49  ;;  %v512_v1 = vmul.f32 %v1110_v63, %v508_v46  ;;  %v1112_v13 = vpop.eup %1111 }
 0x2c3   : > { %v759_v14 = vmul.f32 32.0, %v1112_v13  ;;  %vm763_vm4 = vweird.f32 %v1112_v13 }
 0x2c4   : > { %710 = vrot.lane.b32.xlu1 %v578_v50, %s1364_s21 }
 0x2c5   : > { %v760_v15 = vsub.f32 1.0, %v759_v14 }
 0x2c7   : > { %v761_v16 = vmul.f32 %v1112_v13, %v760_v15 }
 0x2c9   : > { %v704_v53 = vpop.f32.mrf.mxu2  ;;  %v762_v17 = vadd.f32 %v1112_v13, %v761_v16 }
 0x2ca   : > { %v708_v54 = vmul.f32 %v1106_v52, %v704_v53 }
 0x2cb   : > { %v764_v18 = vsel %vm763_vm4, %v1112_v13, %v762_v17 }
 0x2cc   : > { %718 = vrot.lane.b32.xlu2 %v708_v54, %s1365_s13 }
 0x2cf   : > { %v639_v56 = vpop.f32.mrf.mxu3 }
 0x2d0   : > { %v643_v57 = vmul.f32 %v1108_v55, %v639_v56 }
 0x2d2   : > { %714 = vrot.lane.b32.xlu0 %v643_v57, %s1366_s17 }
 0x326   : > { %v719_v4 = vpop.permute.xlu2 %718 }
 0x336   : > { %v711_v0 = vpop.permute.xlu1 %710 }
 0x337   : > { %v721_v2 = vsel %vm452_vm0, %v512_v1, %v711_v0 }
 0x344   : > { %v715_v3 = vpop.permute.xlu0 %714 }
 0x345   : > { %v723_v6 = vsel %vm722_vm2, %v721_v2, %v715_v3 }
 0x346   : > { %v725_v7 = vsel %vm724_vm3, %v723_v6, %v719_v4 }
 0x347   : > { %986 = vmatmul.msk.f32.vlgmr.msra.gmra.mxu1 %vm426_vm1, %v725_v7 }
 0x3c4   : > { %v750_v8 = vpop.f32.mrf.mxu1 }
 0x3c5   : > { %v753_v9 = vmax.f32 %v750_v8, 0.0 }
 0x3c7   : > { %v754_v10 = vadd.f32 %v753_v9, %v1565_v5 }
 0x3c9   : > { %v755_v11 = vsel %vm426_vm1, %v754_v10, 0.0 }
 0x3ca   : > { %756 = vadd.xlane.f32.xlu0 %v755_v11 }
 0x43d   : > { %v757_v19 = vpop.xlane.xlu0 %756 }
 0x43e   : > { %v765_v20 = vmul.f32 %v764_v18, %v757_v19 }
 0x440   : > { %v766_v21 = vsub.f32 %v754_v10, %v765_v20 }
 0x442   : > { %v767_v22 = vmul.f32 %v766_v21, %v766_v21 }
 0x444   : > { %v768_v23 = vsel %vm426_vm1, %v767_v22, 0.0 }
 0x445   : > { %769 = vadd.xlane.f32.xlu1 %v768_v23 }
 0x4b8   : > { %v770_v5 = vpop.xlane.xlu1 %769 }
 0x4b9   : > { %v771_v24 = vmul.f32 %v770_v5, %v764_v18 }
 0x4bb   : > { %v772_v25 = vadd.f32 1e-06, %v771_v24 }
 0x4bd   : > { %1113 = vrsqrt.f32 %v772_v25  ;;  %vm779_vm6 = vweird.f32 %v772_v25 }
 0x4c3   : > { %v1114_v26 = vpop.eup %1113 }
 0x4c4   : > { %v774_v27 = vmul.f32 %v1114_v26, %v772_v25  ;;  %vm780_vm5 = vweird.f32 %v1114_v26 }
 0x4c5   : > { %vm781_vm7 = vmor %vm779_vm6, %vm780_vm5 }
 0x4c6   : > { %v775_v28 = vmul.f32 %v1114_v26, %v774_v27 }
 0x4c8   : > { %v776_v29 = vmul.f32 0.5, %v775_v28 }
 0x4ca   : > { %v777_v30 = vsub.f32 1.5, %v776_v29 }
 0x4cc   : > { %v778_v31 = vmul.f32 %v1114_v26, %v777_v30 }
 0x4ce   : > { %v782_v33 = vsel %vm781_vm7, %v1114_v26, %v778_v31 }
 0x4cf   : > { %v783_v34 = vmul.f32 %v782_v33, %v766_v21 }
 0x4d1   : > { %v788_v36 = vmul.f32 %v1093_v32, %v783_v34 }
 0x4d3   : > { %v793_v37 = vadd.f32 %v1094_v35, %v788_v36 }
 0x4d5   : > { %794 = vst.msk [vmem:[%s420_s27] sm:$0xff] %vm426_vm1, %v793_v37 }
 0x4d6   : > { %1292 = shalt.err (!%p1289_p11)
}
 0x4d7   : > { %1005 = dma.vmem_to_hbm [thread:$0]  (%p1488_p4), %s810_s14, 128, %s812_s9, %s796_s10  }
 0x4d8 PF: > { %s1693_s24 = sld [smem:[#allocation16_spill]] }
 0x4d9   : > { %s1695_s21 = sld [smem:[#allocation19_spill]] }
 0x4de   : > { %s823_s13 = sand.u32 1, %s1693_s24  }
 0x4df   : > { %p1696_p12 = scmp.ge.s32.totalorder %s1695_s21, 2  ;;  %s824_s17 = scalar_lea.sflag [#allocation4], %s823_s13 }
 0x4e1   : > { %p1025_p13 = pnand %p1696_p12, %p1496_p9 }
 0x4e3   : > { %p1026_p0 = pneg %p1025_p13 }
 0x4e5   : > { %1330 = dma.done.wait (%p1026_p0), %s824_s17, 128  }
 0x4e6   : > { %1332 = vsyncadd (%p1026_p0), %s824_s17, 4294967168  ;;  %s27_s29 = sadd.s32 1, %s1695_s21   ;;  %s1697_s15 = sld [smem:[#allocation17_spill]] }
 0x4e7   : > { %p24_p2 = scmp.ge.s32.totalorder %s27_s29, 4   ;;  %s1698_s26 = sld [smem:[#allocation22_spill]] }
 0x4e8   : > { %s1699_s27 = sld [smem:[#allocation18_spill]]  ;;  %s1701_s24 = smov %s1339_s25 }
 0x4e9   : > { %s1700_s28 = sld [smem:[#allocation20_spill]]  ;;  %26 = sbr.rel (!%p24_p2) target bundleno = 14 (0xe), region = 125 }
 0x4ec   : > { %s1702_s25 = smov %s1697_s15 }
 0x4ee   :  { %830 = vsyncpa [#allocation3], 1 }
 0x4ef   :  { %832 = vsyncpa [#allocation3 + $0x1], 1 }
 0x4f0   :  { %833 = vsyncpa [#allocation6], 1 }
 0x4f1   :  { %835 = vsyncpa [#allocation6 + $0x1], 1 }
 0x4f2   :  { %836 = vsyncpa [#allocation9], 1 }
 0x4f3   :  { %837 = vsyncpa [#allocation4], 1 }
 0x4f4   :  { %839 = vsyncpa [#allocation4 + $0x1], 1 }

</bundles_post_ra>
